<compile_context>
chip_gen: v7x
topology: tpu7x:2x2x1
jax: 0.10.0
libtpu: 0.0.40
codegen_flags: <defaults>
</compile_context>

<pallas_src>
import functools

import jax
import jax.numpy as jnp
import numpy as np
from jax import lax
from jax.experimental import pallas as pl
from jax.experimental.pallas import tpu as pltpu


# Unmasked (dy, dx) offsets shared by the two stacks.  The vertical 3x3 conv
# (mask_center=False) uses all six; the horizontal 1x3 conv uses (0,-1), (0,0)
# (its weight columns are zero for the other four groups).
_SHIFT_GROUPS = ((-1, -1), (-1, 0), (-1, 1), (0, -1), (0, 0), (0, 1))

_ROLL_LIKE_JNP = None


def _roll_matches_jnp():
    """One-time, cached check of pltpu.roll's rotate direction.

    The kernel only needs static lane rolls; verifying the sign once (a single
    8x128 kernel) guarantees the baked-in shift amounts match the hardware
    rotate convention.  If no device is available (or the probe fails) we fall
    back to the documented jnp.roll convention.
    """
    global _ROLL_LIKE_JNP
    if _ROLL_LIKE_JNP is None:
        try:
            def probe(o_ref):
                x = lax.broadcasted_iota(jnp.int32, (8, 128), 1)
                o_ref[...] = pltpu.roll(x, 1, axis=1)

            out = pl.pallas_call(
                probe, out_shape=jax.ShapeDtypeStruct((8, 128), jnp.int32))()
            _ROLL_LIKE_JNP = bool(int(out[0, 0]) == 127)
        except Exception:
            _ROLL_LIKE_JNP = True
    return _ROLL_LIKE_JNP


@functools.lru_cache(maxsize=None)
def _im2col_mask(h, w, c, bblk):
    """(6*2C, bblk*H*W) f32 edge-validity mask, pre-broadcast to im2col rows."""
    hw = h * w
    yy, xx = np.divmod(np.arange(hw), w)
    groups = []
    for dy, dx in _SHIFT_GROUPS:
        ok = np.ones(hw, np.float32)
        if dy == -1:
            ok = ok * (yy >= 1)
        if dx == -1:
            ok = ok * (xx >= 1)
        if dx == 1:
            ok = ok * (xx <= w - 2)
        groups.append(np.broadcast_to(ok, (2 * c, hw)))
    m = np.concatenate(groups, axis=0)          # (12C, HW)
    m = np.tile(m, (1, bblk))                   # (12C, bblk*HW)
    return jnp.asarray(m, jnp.float32)


def _gated_kernel(vh_ref, mask_ref, w_ref, b_ref, wh1_ref, bh1_ref,
                  v_out_ref, h_out_ref, *, c, img_w, hw, bblk, roll_like_jnp):
    f32 = jnp.float32
    n = bblk * hw

    # Fold the batch block into the lane axis (HW % 128 == 0 -> aligned lane
    # concat).  Rolls below wrap across image boundaries only at positions the
    # validity mask zeroes anyway.
    if bblk == 1:
        vh = vh_ref[0].astype(f32)                                  # (2C, HW)
    else:
        vh = jnp.concatenate(
            [vh_ref[b].astype(f32) for b in range(bblk)], axis=1)   # (2C, N)

    def shifted(s):
        # out[:, p] = vh[:, (p + s) mod N]
        amt = (-s) % n
        if amt == 0:
            return vh
        if not roll_like_jnp:
            amt = n - amt
        return pltpu.roll(vh, amt, axis=1)

    # Register-resident im2col: one 2C-row (sublane-aligned) rolled copy of the
    # stacked [v; h] slab per unmasked (dy, dx) offset, a single vmul for the
    # image-boundary validity.  No VMEM scratch, no store->load round trip.
    im2col = jnp.concatenate(
        [shifted(dy * img_w + dx) for dy, dx in _SHIFT_GROUPS],
        axis=0) * mask_ref[...]                                     # (12C, N)

    # One fused MXU matmul: vertical 3x3 conv, horizontal 1x3 conv and the
    # folded 1x1 vert->horiz conv; biases added once to the packed features.
    feat = (jnp.dot(w_ref[...], im2col, preferred_element_type=f32)
            + b_ref[...])                                           # (4C, N)

    # Rows packed as [v_val; h_val; v_gate; h_gate]: one tanh + one sigmoid.
    gated = jnp.tanh(feat[:2 * c, :]) * jax.nn.sigmoid(feat[2 * c:, :])
    v_out = gated[:c, :]                                            # (C, N)
    h_act = gated[c:, :]                                            # (C, N)

    h_res = vh[c:, :]                                               # residual
    if c <= 8:
        # Small C: 1x1 conv as C VPU FMAs, avoiding a serial MXU pass + result
        # pop right in front of the h_out store.
        wh1 = wh1_ref[...].astype(f32)
        h_out = h_res + bh1_ref[...]
        for j in range(c):
            h_out = h_out + wh1[:, j:j + 1] * h_act[j:j + 1, :]
    else:
        h_out = (jnp.dot(wh1_ref[...], h_act, preferred_element_type=f32)
                 + bh1_ref[...] + h_res)

    # Per-image stores: each is (C, HW) with HW a multiple of 128 (lane-dense).
    for b in range(bblk):
        sl = slice(b * hw, (b + 1) * hw)
        v_out_ref[b] = v_out[:, sl].astype(v_out_ref.dtype)
        h_out_ref[b] = h_out[:, sl].astype(h_out_ref.dtype)


def gated_masked_conv(v_stack, h_stack, kernel_params, *, batch_block=1):
    """GatedMaskedConv forward.  Inputs/outputs are NCHW (PyTorch layout)."""
    B, C, H, W = v_stack.shape
    HW = H * W
    if B % batch_block:
        raise ValueError("batch_block must divide the batch size")
    if (2 * C) % 8:
        # TODO(synk): pad the channel dim to a multiple of 4 for odd C so the
        # in-kernel sublane concats stay tile aligned.
        raise ValueError("2*C must be a multiple of 8 (sublane alignment)")
    if HW % 128:
        # TODO(synk): pad/tile the spatial axis to a lane multiple.
        raise ValueError("H*W must be a multiple of 128 (lane alignment)")

    w_fused, b_fused, wh1, bh1 = kernel_params

    # Stack v and h along channels once (pure reshape + one concat, no
    # transpose) so every in-kernel im2col piece is a 2C-row aligned slab.
    vh = jnp.concatenate(
        [v_stack.reshape(B, C, HW), h_stack.reshape(B, C, HW)], axis=1)

    masks = _im2col_mask(H, W, C, batch_block)

    kernel = functools.partial(
        _gated_kernel, c=C, img_w=W, hw=HW, bblk=batch_block,
        roll_like_jnp=_roll_matches_jnp())

    batch_map = lambda b: (b, 0, 0)
    const2 = lambda b: (0, 0)

    in_specs = [
        pl.BlockSpec((batch_block, 2 * C, HW), batch_map),
        pl.BlockSpec(masks.shape, const2),
        pl.BlockSpec(w_fused.shape, const2),
        pl.BlockSpec(b_fused.shape, const2),
        pl.BlockSpec(wh1.shape, const2),
        pl.BlockSpec(bh1.shape, const2),
    ]
    out_specs = (pl.BlockSpec((batch_block, C, HW), batch_map),
                 pl.BlockSpec((batch_block, C, HW), batch_map))
    out_shape = (jax.ShapeDtypeStruct((B, C, HW), v_stack.dtype),
                 jax.ShapeDtypeStruct((B, C, HW), h_stack.dtype))

    v_out, h_out = pl.pallas_call(
        kernel,
        grid=(B // batch_block,),
        in_specs=in_specs,
        out_specs=out_specs,
        out_shape=out_shape,
        compiler_params=pltpu.CompilerParams(
            dimension_semantics=("parallel",)),
    )(vh, masks, w_fused, b_fused, wh1, bh1)

    return v_out.reshape(B, C, H, W), h_out.reshape(B, C, H, W)


def init_params(key, c_in):
    """Synthetic parameters (PyTorch layouts) + fused-kernel packing."""
    c2 = 2 * c_in
    keys = jax.random.split(key, 8)
    wv = jax.random.normal(keys[0], (c2, c_in, 3, 3), jnp.float32) * 0.1
    bv = jax.random.normal(keys[1], (c2,), jnp.float32) * 0.1
    wh = jax.random.normal(keys[2], (c2, c_in, 1, 3), jnp.float32) * 0.1
    bh = jax.random.normal(keys[3], (c2,), jnp.float32) * 0.1
    w2 = jax.random.normal(keys[4], (c2, c2, 1, 1), jnp.float32) * 0.1
    b2 = jax.random.normal(keys[5], (c2,), jnp.float32) * 0.1
    w1 = jax.random.normal(keys[6], (c_in, c_in, 1, 1), jnp.float32) * 0.1
    b1 = jax.random.normal(keys[7], (c_in,), jnp.float32) * 0.1

    # PixelCNN causal masks (kernel_size=3, mask_center=False -- defaults).
    mask_v = np.ones((3, 3), np.float32)
    mask_v[2:, :] = 0.0
    mask_h = np.ones((1, 3), np.float32)
    mask_h[0, 2:] = 0.0

    wv_np = np.asarray(wv, np.float64) * mask_v[None, None]
    wh_np = np.asarray(wh, np.float64) * mask_h[None, None]
    w2_np = np.asarray(w2, np.float64)[:, :, 0, 0]      # (2C, 2C) out,in
    w1_np = np.asarray(w1, np.float64)[:, :, 0, 0]      # (C, C)   out,in
    bv_np = np.asarray(bv, np.float64)
    bh_np = np.asarray(bh, np.float64)
    b2_np = np.asarray(b2, np.float64)
    b1_np = np.asarray(b1, np.float64)

    # Fused weight: rows [v_val; h_val; v_gate; h_gate] (tanh operands packed
    # together, sigmoid operands packed together).  Columns: 2C per shift
    # group -- first C columns act on the v-stack rows, last C on the h-stack
    # rows of that group (zero where the horizontal conv has no tap).  The 1x1
    # vert->horiz conv is folded directly into the h_val/h_gate rows.
    w2v = w2_np[:c_in, :]      # (C, 2C): vert->horiz contribution to h_val
    w2g = w2_np[c_in:, :]      # (C, 2C): vert->horiz contribution to h_gate
    w_fused = np.zeros((4 * c_in, len(_SHIFT_GROUPS) * c2), np.float64)
    for g, (dy, dx) in enumerate(_SHIFT_GROUPS):
        wv_tap = wv_np[:, :, dy + 1, dx + 1]             # (2C, C)
        cv = g * c2
        ch = g * c2 + c_in
        w_fused[0 * c_in:1 * c_in, cv:cv + c_in] = wv_tap[:c_in]   # v_val
        w_fused[1 * c_in:2 * c_in, cv:cv + c_in] = w2v @ wv_tap    # h_val
        w_fused[2 * c_in:3 * c_in, cv:cv + c_in] = wv_tap[c_in:]   # v_gate
        w_fused[3 * c_in:4 * c_in, cv:cv + c_in] = w2g @ wv_tap    # h_gate
        if dy == 0 and dx in (-1, 0):
            wh_tap = wh_np[:, :, 0, dx + 1]              # (2C, C)
            w_fused[1 * c_in:2 * c_in, ch:ch + c_in] = wh_tap[:c_in]
            w_fused[3 * c_in:4 * c_in, ch:ch + c_in] = wh_tap[c_in:]

    v2h_bias = w2_np @ bv_np + b2_np
    b_fused = np.zeros((4 * c_in,), np.float64)
    b_fused[0 * c_in:1 * c_in] = bv_np[:c_in]
    b_fused[1 * c_in:2 * c_in] = bh_np[:c_in] + v2h_bias[:c_in]
    b_fused[2 * c_in:3 * c_in] = bv_np[c_in:]
    b_fused[3 * c_in:4 * c_in] = bh_np[c_in:] + v2h_bias[c_in:]

    kernel_params = (
        jnp.asarray(w_fused, jnp.float32),
        jnp.asarray(b_fused.reshape(-1, 1), jnp.float32),
        jnp.asarray(w1_np, jnp.float32),
        jnp.asarray(b1_np.reshape(-1, 1), jnp.float32),
    )

    return {
        'kernel': kernel_params,
        # Pure-JAX reference parameters (HWIO conv layouts).
        'wv_hwio': jnp.asarray(np.transpose(wv_np, (2, 3, 1, 0)), jnp.float32),
        'bv': jnp.asarray(bv_np, jnp.float32),
        'wh_hwio': jnp.asarray(np.transpose(wh_np, (2, 3, 1, 0)), jnp.float32),
        'bh': jnp.asarray(bh_np, jnp.float32),
        'wv2h': jnp.asarray(w2_np.T, jnp.float32),
        'bv2h': jnp.asarray(b2_np, jnp.float32),
        'wh1': jnp.asarray(w1_np.T, jnp.float32),
        'bh1': jnp.asarray(b1_np, jnp.float32),
    }


def reference(v_nchw, h_nchw, p):
    """Pure-JAX reference matching the PyTorch forward."""
    dn = ('NHWC', 'HWIO', 'NHWC')
    v = jnp.transpose(v_nchw, (0, 2, 3, 1))
    h = jnp.transpose(h_nchw, (0, 2, 3, 1))
    C = v.shape[-1]

    v_feat = lax.conv_general_dilated(v, p['wv_hwio'], (1, 1), [(1, 1), (1, 1)],
                                      dimension_numbers=dn) + p['bv']
    v_out = jnp.tanh(v_feat[..., :C]) * jax.nn.sigmoid(v_feat[..., C:])

    h_feat = lax.conv_general_dilated(h, p['wh_hwio'], (1, 1), [(0, 0), (1, 1)],
                                      dimension_numbers=dn) + p['bh']
    h_feat = h_feat + jnp.einsum('bhwc,cd->bhwd', v_feat, p['wv2h']) + p['bv2h']
    h_act = jnp.tanh(h_feat[..., :C]) * jax.nn.sigmoid(h_feat[..., C:])
    h_out = jnp.einsum('bhwc,cd->bhwd', h_act, p['wh1']) + p['bh1'] + h

    return (jnp.transpose(v_out, (0, 3, 1, 2)),
            jnp.transpose(h_out, (0, 3, 1, 2)))


if __name__ == "__main__":
    key = jax.random.PRNGKey(0)
    k1, k2, k3, k4, k5 = jax.random.split(key, 5)
    B, C, H, W = 2, 4, 16, 16
    v_stack = jax.random.normal(k1, (B, C, H, W), jnp.float32)
    h_stack = jax.random.normal(k2, (B, C, H, W), jnp.float32)
    params = init_params(k3, C)

    # One image per grid step (2 parallel steps -> both v7x cores busy).
    v_out, h_out = gated_masked_conv(v_stack, h_stack, params['kernel'])
    jax.block_until_ready((v_out, h_out))

    v_ref, h_ref = reference(v_stack, h_stack, params)
    np.testing.assert_allclose(np.asarray(v_out), np.asarray(v_ref),
                               atol=5e-4, rtol=5e-4)
    np.testing.assert_allclose(np.asarray(h_out), np.asarray(h_ref),
                               atol=5e-4, rtol=5e-4)

    # Also exercise the batch->lane folded path (2 images per grid step).
    B2 = 4
    v2 = jax.random.normal(k4, (B2, C, H, W), jnp.float32)
    h2 = jax.random.normal(k5, (B2, C, H, W), jnp.float32)
    v_out2, h_out2 = gated_masked_conv(v2, h2, params['kernel'], batch_block=2)
    jax.block_until_ready((v_out2, h_out2))
    v_ref2, h_ref2 = reference(v2, h2, params)
    np.testing.assert_allclose(np.asarray(v_out2), np.asarray(v_ref2),
                               atol=5e-4, rtol=5e-4)
    np.testing.assert_allclose(np.asarray(h_out2), np.asarray(h_ref2),
                               atol=5e-4, rtol=5e-4)

    print("KERNEL_OK")
</pallas_src>

<mosaic_0001>
module attributes {stable_mosaic.version = 11 : i64} {
  func.func @_gated_kernel(%arg0: i32, %arg1: memref<1x8x256xf32, #tpu.memory_space<vmem>>, %arg2: memref<48x256xf32, #tpu.memory_space<vmem>>, %arg3: memref<16x48xf32, #tpu.memory_space<vmem>>, %arg4: memref<16x1xf32, #tpu.memory_space<vmem>>, %arg5: memref<4x4xf32, #tpu.memory_space<vmem>>, %arg6: memref<4x1xf32, #tpu.memory_space<vmem>>, %arg7: memref<1x4x256xf32, #tpu.memory_space<vmem>>, %arg8: memref<1x4x256xf32, #tpu.memory_space<vmem>>) attributes {dimension_semantics = [#tpu.dimension_semantics<parallel>], iteration_bounds = array<i64: 2>, scalar_prefetch = 0 : i64, scratch_operands = 0 : i64, tpu.core_type = #tpu.core_type<tc>, window_params = [{transform_indices = @transform_0, window_bounds = array<i64: 1, 8, 256>}, {pipeline_mode = #tpu.pipeline_mode<synchronous>, transform_indices = @transform_1, window_bounds = array<i64: 48, 256>}, {pipeline_mode = #tpu.pipeline_mode<synchronous>, transform_indices = @transform_2, window_bounds = array<i64: 16, 48>}, {pipeline_mode = #tpu.pipeline_mode<synchronous>, transform_indices = @transform_3, window_bounds = array<i64: 16, 1>}, {pipeline_mode = #tpu.pipeline_mode<synchronous>, transform_indices = @transform_4, window_bounds = array<i64: 4, 4>}, {pipeline_mode = #tpu.pipeline_mode<synchronous>, transform_indices = @transform_5, window_bounds = array<i64: 4, 1>}, {transform_indices = @transform_6, window_bounds = array<i64: 1, 4, 256>}, {transform_indices = @transform_7, window_bounds = array<i64: 1, 4, 256>}]} {
    %c0 = arith.constant 0 : index
    %c0_0 = arith.constant 0 : index
    %c0_1 = arith.constant 0 : index
    %0 = vector.load %arg1[%c0, %c0_0, %c0_1] : memref<1x8x256xf32, #tpu.memory_space<vmem>>, vector<1x8x256xf32>
    %1 = vector.shape_cast %0 : vector<1x8x256xf32> to vector<8x256xf32>
    %c17_i32 = arith.constant 17 : i32
    %2 = tpu.dynamic_rotate %1 by %c17_i32 dim 1 : vector<8x256xf32>, i32 -> vector<8x256xf32>
    %c16_i32 = arith.constant 16 : i32
    %3 = tpu.dynamic_rotate %1 by %c16_i32 dim 1 : vector<8x256xf32>, i32 -> vector<8x256xf32>
    %c15_i32 = arith.constant 15 : i32
    %4 = tpu.dynamic_rotate %1 by %c15_i32 dim 1 : vector<8x256xf32>, i32 -> vector<8x256xf32>
    %c1_i32 = arith.constant 1 : i32
    %5 = tpu.dynamic_rotate %1 by %c1_i32 dim 1 : vector<8x256xf32>, i32 -> vector<8x256xf32>
    %c255_i32 = arith.constant 255 : i32
    %6 = tpu.dynamic_rotate %1 by %c255_i32 dim 1 : vector<8x256xf32>, i32 -> vector<8x256xf32>
    %7 = tpu.concatenate %2, %3, %4, %5, %1, %6 in 0 : vector<8x256xf32>, vector<8x256xf32>, vector<8x256xf32>, vector<8x256xf32>, vector<8x256xf32>, vector<8x256xf32> -> vector<48x256xf32>
    %c0_2 = arith.constant 0 : index
    %c0_3 = arith.constant 0 : index
    %8 = vector.load %arg2[%c0_2, %c0_3] : memref<48x256xf32, #tpu.memory_space<vmem>>, vector<48x256xf32>
    %9 = arith.mulf %7, %8 : vector<48x256xf32>
    %c0_4 = arith.constant 0 : index
    %c0_5 = arith.constant 0 : index
    %10 = vector.load %arg3[%c0_4, %c0_5] : memref<16x48xf32, #tpu.memory_space<vmem>>, vector<16x48xf32>
    %cst = arith.constant dense<0.000000e+00> : vector<16x256xf32>
    %11 = tpu.matmul %10, %9, %cst {dimension_numbers = #tpu.dot_dimension_numbers<[1], [0], [0], [1], [0, 0, 1, 1], [], []>} : vector<16x48xf32>, vector<48x256xf32>, vector<16x256xf32> -> vector<16x256xf32>
    %c0_6 = arith.constant 0 : index
    %c0_7 = arith.constant 0 : index
    %12 = vector.load %arg4[%c0_6, %c0_7] : memref<16x1xf32, #tpu.memory_space<vmem>>, vector<16x1xf32>
    %13 = vector.broadcast %12 : vector<16x1xf32> to vector<16x256xf32>
    %14 = arith.addf %11, %13 : vector<16x256xf32>
    %15 = vector.extract_strided_slice %14 {offsets = [0, 0], sizes = [8, 256], strides = [1, 1]} : vector<16x256xf32> to vector<8x256xf32>
    %16 = math.tanh %15 : vector<8x256xf32>
    %17 = vector.extract_strided_slice %14 {offsets = [8, 0], sizes = [8, 256], strides = [1, 1]} : vector<16x256xf32> to vector<8x256xf32>
    %18 = arith.negf %17 : vector<8x256xf32>
    %19 = math.exp %18 : vector<8x256xf32>
    %cst_8 = arith.constant 1.000000e+00 : f32
    %20 = vector.broadcast %cst_8 : f32 to vector<8x256xf32>
    %21 = arith.addf %20, %19 : vector<8x256xf32>
    %22 = arith.divf %20, %21 : vector<8x256xf32>
    %23 = arith.mulf %16, %22 : vector<8x256xf32>
    %24 = vector.extract_strided_slice %23 {offsets = [0, 0], sizes = [4, 256], strides = [1, 1]} : vector<8x256xf32> to vector<4x256xf32>
    %25 = vector.extract_strided_slice %23 {offsets = [4, 0], sizes = [4, 256], strides = [1, 1]} : vector<8x256xf32> to vector<4x256xf32>
    %26 = vector.extract_strided_slice %1 {offsets = [4, 0], sizes = [4, 256], strides = [1, 1]} : vector<8x256xf32> to vector<4x256xf32>
    %c0_9 = arith.constant 0 : index
    %c0_10 = arith.constant 0 : index
    %27 = vector.load %arg5[%c0_9, %c0_10] : memref<4x4xf32, #tpu.memory_space<vmem>>, vector<4x4xf32>
    %c0_11 = arith.constant 0 : index
    %c0_12 = arith.constant 0 : index
    %28 = vector.load %arg6[%c0_11, %c0_12] : memref<4x1xf32, #tpu.memory_space<vmem>>, vector<4x1xf32>
    %29 = vector.broadcast %28 : vector<4x1xf32> to vector<4x256xf32>
    %30 = arith.addf %26, %29 : vector<4x256xf32>
    %31 = vector.extract_strided_slice %27 {offsets = [0, 0], sizes = [4, 1], strides = [1, 1]} : vector<4x4xf32> to vector<4x1xf32>
    %32 = vector.extract_strided_slice %25 {offsets = [0, 0], sizes = [1, 256], strides = [1, 1]} : vector<4x256xf32> to vector<1x256xf32>
    %33 = vector.broadcast %31 : vector<4x1xf32> to vector<4x256xf32>
    %34 = vector.broadcast %32 : vector<1x256xf32> to vector<4x256xf32>
    %35 = arith.mulf %33, %34 : vector<4x256xf32>
    %36 = arith.addf %30, %35 : vector<4x256xf32>
    %37 = vector.extract_strided_slice %27 {offsets = [0, 1], sizes = [4, 1], strides = [1, 1]} : vector<4x4xf32> to vector<4x1xf32>
    %38 = vector.extract_strided_slice %25 {offsets = [1, 0], sizes = [1, 256], strides = [1, 1]} : vector<4x256xf32> to vector<1x256xf32>
    %39 = vector.broadcast %37 : vector<4x1xf32> to vector<4x256xf32>
    %40 = vector.broadcast %38 : vector<1x256xf32> to vector<4x256xf32>
    %41 = arith.mulf %39, %40 : vector<4x256xf32>
    %42 = arith.addf %36, %41 : vector<4x256xf32>
    %43 = vector.extract_strided_slice %27 {offsets = [0, 2], sizes = [4, 1], strides = [1, 1]} : vector<4x4xf32> to vector<4x1xf32>
    %44 = vector.extract_strided_slice %25 {offsets = [2, 0], sizes = [1, 256], strides = [1, 1]} : vector<4x256xf32> to vector<1x256xf32>
    %45 = vector.broadcast %43 : vector<4x1xf32> to vector<4x256xf32>
    %46 = vector.broadcast %44 : vector<1x256xf32> to vector<4x256xf32>
    %47 = arith.mulf %45, %46 : vector<4x256xf32>
    %48 = arith.addf %42, %47 : vector<4x256xf32>
    %49 = vector.extract_strided_slice %27 {offsets = [0, 3], sizes = [4, 1], strides = [1, 1]} : vector<4x4xf32> to vector<4x1xf32>
    %50 = vector.extract_strided_slice %25 {offsets = [3, 0], sizes = [1, 256], strides = [1, 1]} : vector<4x256xf32> to vector<1x256xf32>
    %51 = vector.broadcast %49 : vector<4x1xf32> to vector<4x256xf32>
    %52 = vector.broadcast %50 : vector<1x256xf32> to vector<4x256xf32>
    %53 = arith.mulf %51, %52 : vector<4x256xf32>
    %54 = arith.addf %48, %53 : vector<4x256xf32>
    %c0_13 = arith.constant 0 : index
    %c0_14 = arith.constant 0 : index
    %c0_15 = arith.constant 0 : index
    %55 = vector.load %arg7[%c0_13, %c0_14, %c0_15] : memref<1x4x256xf32, #tpu.memory_space<vmem>>, vector<1x4x256xf32>
    %56 = vector.shape_cast %55 : vector<1x4x256xf32> to vector<4x256xf32>
    %57 = vector.shape_cast %24 : vector<4x256xf32> to vector<1x4x256xf32>
    tpu.vector_store %arg7[%c0_13, %c0_14, %c0_15], %57 {strides = array<i32>} : memref<1x4x256xf32, #tpu.memory_space<vmem>>, vector<1x4x256xf32>,
    %c0_16 = arith.constant 0 : index
    %c0_17 = arith.constant 0 : index
    %c0_18 = arith.constant 0 : index
    %58 = vector.load %arg8[%c0_16, %c0_17, %c0_18] : memref<1x4x256xf32, #tpu.memory_space<vmem>>, vector<1x4x256xf32>
    %59 = vector.shape_cast %58 : vector<1x4x256xf32> to vector<4x256xf32>
    %60 = vector.shape_cast %54 : vector<4x256xf32> to vector<1x4x256xf32>
    tpu.vector_store %arg8[%c0_16, %c0_17, %c0_18], %60 {strides = array<i32>} : memref<1x4x256xf32, #tpu.memory_space<vmem>>, vector<1x4x256xf32>,
    return
  }
  func.func @transform_0(%arg0: i32) -> (i32, i32, i32) {
    %c0_i32 = arith.constant 0 : i32
    %c0_i32_0 = arith.constant 0 : i32
    %c0_i32_1 = arith.constant 0 : i32
    return %arg0, %c0_i32, %c0_i32_0 : i32, i32, i32
  }
  func.func @transform_1(%arg0: i32) -> (i32, i32) {
    %c0_i32 = arith.constant 0 : i32
    %c0_i32_0 = arith.constant 0 : i32
    %c0_i32_1 = arith.constant 0 : i32
    return %c0_i32, %c0_i32_0 : i32, i32
  }
  func.func @transform_2(%arg0: i32) -> (i32, i32) {
    %c0_i32 = arith.constant 0 : i32
    %c0_i32_0 = arith.constant 0 : i32
    %c0_i32_1 = arith.constant 0 : i32
    return %c0_i32, %c0_i32_0 : i32, i32
  }
  func.func @transform_3(%arg0: i32) -> (i32, i32) {
    %c0_i32 = arith.constant 0 : i32
    %c0_i32_0 = arith.constant 0 : i32
    %c0_i32_1 = arith.constant 0 : i32
    return %c0_i32, %c0_i32_0 : i32, i32
  }
  func.func @transform_4(%arg0: i32) -> (i32, i32) {
    %c0_i32 = arith.constant 0 : i32
    %c0_i32_0 = arith.constant 0 : i32
    %c0_i32_1 = arith.constant 0 : i32
    return %c0_i32, %c0_i32_0 : i32, i32
  }
  func.func @transform_5(%arg0: i32) -> (i32, i32) {
    %c0_i32 = arith.constant 0 : i32
    %c0_i32_0 = arith.constant 0 : i32
    %c0_i32_1 = arith.constant 0 : i32
    return %c0_i32, %c0_i32_0 : i32, i32
  }
  func.func @transform_6(%arg0: i32) -> (i32, i32, i32) {
    %c0_i32 = arith.constant 0 : i32
    %c0_i32_0 = arith.constant 0 : i32
    %c0_i32_1 = arith.constant 0 : i32
    return %arg0, %c0_i32, %c0_i32_0 : i32, i32, i32
  }
  func.func @transform_7(%arg0: i32) -> (i32, i32, i32) {
    %c0_i32 = arith.constant 0 : i32
    %c0_i32_0 = arith.constant 0 : i32
    %c0_i32_1 = arith.constant 0 : i32
    return %arg0, %c0_i32, %c0_i32_0 : i32, i32, i32
  }
}

</mosaic_0001>

<bundles_post_ra>
// kernel: tpu_custom_call.1
= control target key start
LH: loop header
LB: loop body
LE: loop exit
PB: predicated region body
PF: predicated region fallthrough
CT: control target
= control target key end

     0   :  { %13 = vsyncpa [#allocation3], 0  ;;  %s1382_s0 = inlined_call_operand.hbm [shape: f32[2,8,256], index: 0, kind: input, shape index: {}]   ;;  %s1383_s1 = inlined_call_operand.hbm [shape: f32[48,256], index: 1, kind: input, shape index: {}]   ;;  %s1384_s2 = inlined_call_operand.vmem [shape: f32[16,48], index: 2, kind: input, shape index: {}]   ;;  %s1385_s3 = inlined_call_operand.vmem [shape: f32[16,1], index: 3, kind: input, shape index: {}]   ;;  %s1386_s4 = inlined_call_operand.vmem [shape: f32[4,4], index: 4, kind: input, shape index: {}]   ;;  %s1387_s5 = inlined_call_operand.vmem [shape: f32[4,1], index: 5, kind: input, shape index: {}]   ;;  %s1388_s6 = inlined_call_operand.hbm [shape: f32[2,4,256], index: 6, kind: output, shape index: {0}]   ;;  %s1389_s7 = inlined_call_operand.hbm [shape: f32[2,4,256], index: 7, kind: output, shape index: {1}]  }
   0x1   :  { %15 = vsyncpa [#allocation3 + $0x1], 0 }
   0x2   :  { %16 = vsyncpa [#allocation6], 0 }
   0x3   :  { %17 = vsyncpa [#allocation4], 0 }
   0x4   :  { %19 = vsyncpa [#allocation4 + $0x1], 0 }
   0x5   :  { %20 = vsyncpa [#allocation9], 0 }
   0x6   :  { %22 = vsyncpa [#allocation9 + $0x1], 0  ;;  %s1108_s24 = smov 0   ;;  %s1110_s25 = smov 0  }
   0x7   :  { %s1112_s26 = smov 0   ;;  %s1114_s27 = smov 0  }
   0x8 LB: > { %s1129_s28 = sadd.s32 4294967295, %s1050_s27   ;;  %s753_s29 = sadd.s32 4294967294, %s1050_s27   ;;  %s1050_s27 = sphi %s1114_s27, %s1409_s27   ;;  %s1046_s26 = sphi %s1112_s26, %s1408_s26   ;;  %s1042_s25 = sphi %s1110_s25, %s1407_s25   ;;  %s1038_s24 = sphi %s1108_s24, %s1406_s24  }
   0x9   : > { %p48_p0 = scmp.ne.s32.totalorder %s1042_s25, %s1038_s24  ;;  %p1390_p1 = scmp.eq.s32.totalorder %s1129_s28, 0 }
   0xa   : > { %p183_p3 = scmp.eq.s32.totalorder %s753_s29, 1  ;;  %p754_p5 = scmp.ge.s32.totalorder %s1050_s27, 1 }
   0xb   : > { %p1138_p4 = por %p1390_p1, %p48_p0  ;;  %p216_p7 = scmp.lt.s32.totalorder %s1050_s27, 3 }
   0xc   : > { %p1143_p6 = por %p183_p3, %p48_p0  ;;  %s1052_s10 = smov [#allocation5]  }
   0xd   : > { %s1393_s30 = scalar_select %p1138_p4, 1, 0 }
   0xe   : > { %s1394_s8 = scalar_select %p1143_p6, 1, 0 }
   0xf   : > { %p1148_p8 = pnand %p754_p5, %p216_p7  ;;  %s228_s11 = sshll.u32 %s1052_s10, 4  ;;  %s1152_s11 = int_to_ptr.vmem [resolvable:$true] %s228_s11 }
  0x10   : > { %s1164_s13 = sadd.s32 1, %s1050_s27   ;;  %s35_s14 = sadd.s32 1, %s1046_s26 }
  0x11   : > { %s1395_s9 = scalar_select %p1148_p8, 1, 0 }
  0x12   : > { %p808_p9 = pneg %p1148_p8  ;;  %s32_s15 = ssub.s32 %s1050_s27, %s1164_s13 }
  0x13   : > { %s890_s18 = scalar_lea.hbm %s1383_s1, 1536 }
  0x14   : > { %p1159_p11 = pnand %p808_p9, %p1390_p1  ;;  %p891_p12 = scmp.ne.s32.totalorder %s1383_s1, %s890_s18 }
  0x15   : > { %p897_p5 = scmp.lt.u32.totalorder %s890_s18, %s1383_s1 }
  0x16   : > { %p892_p13 = pneg %p1159_p11 }
  0x18   : > { %p893_p0 = pnand %p892_p13, %p891_p12 }
  0x1a   : > { %p894_p3 = pneg %p893_p0 }
  0x1c   : > { %p899_p7 = pnand %p897_p5, %p894_p3 }
  0x1e   : > { %902 = shalt.err (!%p899_p7)
}
  0x1f   : > { %s903_s23 = scalar_lea.vmem %s1152_s11, 1536  ;;  %p911_p2 = scmp.lt.s32.totalorder %s1152_s11, %s1152_s11 }
  0x20   : > { %p904_p9 = scmp.ne.s32.totalorder %s1152_s11, %s903_s23  ;;  %p912_p6 = scmp.lt.s32.totalorder %s903_s23, %s903_s23 }
  0x22   : > { %p906_p10 = pnand %p904_p9, %p892_p13  ;;  %p913_p4 = por %p912_p6, %p911_p2 }
  0x24   : > { %p907_p1 = pneg %p906_p10 }
  0x26   : > { %p914_p8 = pnand %p913_p4, %p907_p1 }
  0x28   : > { %917 = shalt.err (!%p914_p8)
}
  0x29   : > { %s1053_s29 = smov 256   ;;  %s1054_s10 = smov 16  }
  0x2a   : > { %811 = dma.hbm_to_vmem [thread:$0]  (!%p1159_p11), %s1383_s1, 1536, %s1152_s11, [#allocation6], %s1053_s29, %s1053_s29, %s1054_s10  }
  0x2b   : > { %p33_p2 = scmp.eq.s32.totalorder %s32_s15, 0  ;;  %p42_p1 = scmp.ne.s32.totalorder %s1046_s26, %s1042_s25 }
  0x2c   : > { %p43_p4 = scmp.eq.s32.totalorder %s1050_s27, 0  ;;  %p824_p6 = scmp.lt.s32.totalorder %s1050_s27, 2 }
  0x2d   : > { %s1195_s18 = scalar_select %p33_p2, %s1046_s26, %s35_s14  }
  0x2e   : > { %p44_p8 = por %p43_p4, %p42_p1  ;;  %p1397_p10 = scmp.eq.s32.totalorder %s1129_s28, 1 }
  0x2f   : > { %s254_s20 = sand.u32 1, %s1046_s26   ;;  %s777_s21 = sshll.u32 %s1050_s27, 8 }
  0x30   : > { %p1199_p12 = por %p1397_p10, %p42_p1  ;;  %s757_s22 = sshll.u32 %s254_s20, 4 }
  0x31   : > { %s1208_s16 = scalar_lea.hbm %s1382_s0, %s777_s21  ;;  %s258_s11 = scalar_lea.vmem [#allocation2], %s757_s22 }
  0x32   : > { %s266_s14 = sshll.u32 %s258_s11, 4  ;;  %p1210_p11 = pnand %p824_p6, %p44_p8  ;;  %s1214_s14 = int_to_ptr.vmem [resolvable:$true] %s266_s14 }
  0x33   : > { %s255_s29 = scalar_lea.sflag [#allocation3], %s254_s20  ;;  %s918_s10 = scalar_lea.hbm %s1208_s16, 256 }
  0x34   : > { %p919_p13 = scmp.ne.s32.totalorder %s1208_s16, %s918_s10  ;;  %p920_p0 = pneg %p1210_p11 }
  0x35   : > { %s923_s22 = scalar_lea.hbm %s1382_s0, 512  ;;  %p924_p7 = scmp.lt.u32.totalorder %s1208_s16, %s1382_s0 }
  0x36   : > { %p921_p3 = pnand %p920_p0, %p919_p13  ;;  %p925_p9 = scmp.lt.u32.totalorder %s923_s22, %s918_s10 }
  0x37   : > { %p927_p1 = scmp.lt.u32.totalorder %s918_s10, %s1208_s16 }
  0x38   : > { %p922_p5 = pneg %p921_p3  ;;  %p926_p2 = por %p925_p9, %p924_p7 }
  0x3a   : > { %p928_p4 = por %p927_p1, %p926_p2 }
  0x3c   : > { %p929_p6 = pnand %p928_p4, %p922_p5 }
  0x3e   : > { %932 = shalt.err (!%p929_p6)
}
  0x3f   : > { %s933_s20 = scalar_lea.vmem %s1214_s14, 256  ;;  %s1055_s11 = smov [#allocation2]  }
  0x40   : > { %p934_p8 = scmp.ne.s32.totalorder %s1214_s14, %s933_s20  ;;  %s938_s17 = sshll.u32 %s1055_s11, 4  ;;  %s939_s17 = int_to_ptr.vmem [resolvable:$false] %s938_s17 }
  0x41   : > { %s940_s21 = scalar_lea.vmem %s939_s17, 512  ;;  %p941_p3 = scmp.lt.s32.totalorder %s1214_s14, %s939_s17 }
  0x42   : > { %p936_p10 = pnand %p934_p8, %p920_p0  ;;  %p942_p7 = scmp.lt.s32.totalorder %s940_s21, %s933_s20 }
  0x44   : > { %p937_p13 = pneg %p936_p10  ;;  %p943_p9 = por %p942_p7, %p941_p3 }
  0x46   : > { %p944_p2 = pnand %p943_p9, %p937_p13 }
  0x48   : > { %947 = shalt.err (!%p944_p2)
}
  0x49   : > { %815 = dma.hbm_to_vmem [thread:$0]  (!%p1210_p11), %s1208_s16, 256, %s1214_s14, %s255_s29  }
  0x4a   : > { %p1400_p5 = scmp.ne.s32.totalorder %s1395_s9, 0 }
  0x4b   : > { %s1244_s10 = sand.u32 (!%p1400_p5), 1, %s1042_s25   ;;  %p1401_p0 = scmp.ne.s32.totalorder (!%p1400_p5), %s1393_s30, 0 }
  0x4c   : > { %275 = sbr.rel (%p1400_p5) target bundleno = 517 (0x205), region = 44  ;;  %s761_s22 = sshll.u32 (!%p1400_p5), %s1244_s10, 4 }
  0x4d   : > { %s278_s12 = scalar_lea.sflag (!%p1400_p5), [#allocation3], %s1244_s10  ;;  %s281_s23 = scalar_lea.vmem (!%p1400_p5), [#allocation2], %s761_s22 }
  0x53   : > { %1021 = dma.done.wait (%p1401_p0), %s278_s12, 256  }
  0x54   : > { %1023 = vsyncadd (%p1401_p0), %s278_s12, 4294967040  ;;  %p1402_p1 = scmp.eq.s32.totalorder %s1129_s28, 0 }
  0x56   : > { %1025 = dma.done.wait (%p1402_p1), [#allocation6], 1536   ;;  %p1403_p11 = pmov %p1402_p1 }
  0x57   : > { %v1256_v0 = vld [vmem:[%s281_s23] sm:$0xff]  ;;  %s1056_s9 = smov 16   ;;  %s1057_s16 = smov 17   ;;  %v1260_v1 = vld [vmem:[%s281_s23 + $0x8] sm:$0xff]  ;;  %v1059_v2 = vmov 0.0   ;;  %v1061_v3 = vmov 0   ;;  %v327_v11 = vlaneseq }
  0x58   : > { %1027 = vsyncadd (%p1403_p11), [#allocation6], 4294965760  ;;  %332 = vrot.lane.b32.xlu1 %v1256_v0, %s1056_s9  ;;  %323 = vrot.lane.b32.xlu0 %v1256_v0, %s1057_s16  ;;  %s1058_s30 = smov 15   ;;  %s1060_s14 = smov 1   ;;  %v387_v4 = vld [vmem:[%s1385_s3 + $0x8] sm:$0xff]  ;;  %v386_v5 = vld [vmem:[%s1385_s3] sm:$0xff] }
  0x59   : > { %475 = vmatprep.mubr.f32.mxu1 %v1059_v2  ;;  %469 = vmatprep.mubr.f32.mxu0 %v1059_v2  ;;  %s1062_s15 = smov 127   ;;  %v498_v6 = vld [vmem:[%s1386_s4] sm:$0xf]  ;;  %v1063_v8 = vmov 1   ;;  %v1064_v9 = vmov 2   ;;  %v1065_v10 = vmov 3  }
  0x5a   : > { %872 = vset.pattern.permute.xlu0 %v1061_v3  ;;  %873 = vset.pattern.permute.xlu1 %v1061_v3  ;;  %v499_v7 = vld [vmem:[%s1387_s5] sm:$0xf]  ;;  %v328_v12 = vand.u32 127, %v327_v11  ;;  %v362_v15 = vld [vmem:[#allocation5 + $0x10] sm:$0xff]  ;;  %v363_v16 = vld [vmem:[#allocation5 + $0x18] sm:$0xff]  ;;  %vm398_vm5 = vcmask 392192  }
  0x5b   : > { %v360_v17 = vld [vmem:[#allocation5] sm:$0xff]  ;;  %v361_v18 = vld [vmem:[#allocation5 + $0x8] sm:$0xff]  ;;  %v366_v37 = vld [vmem:[#allocation5 + $0x30] sm:$0xff]  ;;  %s778_s29 = sshll.u32 %s1129_s28, 7  ;;  %s608_s12 = scalar_lea.sflag [#allocation4], %s1244_s10 }
  0x5c   : > { %334 = vrot.lane.b32.xlu1 %v1260_v1, %s1056_s9  ;;  %325 = vrot.lane.b32.xlu0 %v1260_v1, %s1057_s16  ;;  %vm336_vm0 = vcmp.lt.s32.totalorder %v328_v12, 16  ;;  %vm329_vm1 = vcmp.lt.s32.totalorder %v328_v12, 17  ;;  %vm343_vm2 = vcmp.lt.s32.totalorder %v328_v12, 15  ;;  %v364_v33 = vld [vmem:[#allocation5 + $0x20] sm:$0xff]  ;;  %vm350_vm3 = vcmp.lt.s32.totalorder %v328_v12, 1  ;;  %v365_v34 = vld [vmem:[#allocation5 + $0x28] sm:$0xff]  ;;  %s1305_s22 = scalar_lea.hbm %s1388_s6, %s778_s29 }
  0x5d   : > { %v367_v38 = vld [vmem:[#allocation5 + $0x38] sm:$0xff]  ;;  %vm357_vm4 = vcmp.lt.s32.totalorder %v328_v12, 127  ;;  %v369_v43 = vld [vmem:[#allocation5 + $0x48] sm:$0xff]  ;;  %v368_v44 = vld [vmem:[#allocation5 + $0x40] sm:$0xff]  ;;  %s1066_s9 = smov [#allocation7]  }
  0x5e   : > { %v370_v49 = vld [vmem:[#allocation5 + $0x50] sm:$0xff]  ;;  %v371_v50 = vld [vmem:[#allocation5 + $0x58] sm:$0xff]  ;;  %v381_v55 = vmul.f32 %v369_v43, %v1260_v1  ;;  %v380_v56 = vmul.f32 %v368_v44, %v1256_v0  ;;  %v385_v63 = vld [vmem:[%s1384_s2 + $0x8] sm:$0xff]  ;;  %s952_s16 = sshll.u32 %s1066_s9, 4  ;;  %s953_s16 = int_to_ptr.vmem [resolvable:$false] %s952_s16 }
  0x5f   : > { %v384_v2 = vld [vmem:[%s1384_s2] sm:$0xff] }
  0x60   : > { %341 = vrot.lane.b32.xlu1 %v1260_v1, %s1058_s30  ;;  %339 = vrot.lane.b32.xlu0 %v1256_v0, %s1058_s30  ;;  %s954_s30 = scalar_lea.vmem %s953_s16, 256 }
  0x64   : > { %348 = vrot.lane.b32.xlu1 %v1260_v1, %s1060_s14  ;;  %346 = vrot.lane.b32.xlu0 %v1256_v0, %s1060_s14 }
  0x68   : > { %355 = vrot.lane.b32.xlu1 %v1260_v1, %s1062_s15  ;;  %353 = vrot.lane.b32.xlu0 %v1256_v0, %s1062_s15  ;;  %s763_s15 = sshll.u32 %s1244_s10, 3 }
  0x69   : > { %s313_s20 = scalar_lea.vmem [#allocation7], %s763_s15 }
  0x6a   : > { %s627_s11 = sshll.u32 %s313_s20, 4  ;;  %s1307_s11 = int_to_ptr.vmem [resolvable:$true] %s627_s11 }
  0x6b   : > { %s948_s23 = scalar_lea.vmem %s1307_s11, 128  ;;  %p955_p10 = scmp.lt.s32.totalorder %s1307_s11, %s953_s16 }
  0x6c   : > { %395 = vperm.xlu0 %872, %v387_v4   ;;  %390 = vperm.xlu1 %873, %v386_v5   ;;  %p949_p4 = scmp.ne.s32.totalorder %s1307_s11, %s948_s23  ;;  %p956_p13 = scmp.lt.s32.totalorder %s954_s30, %s948_s23 }
  0x6e   : > { %p950_p6 = pnand %p949_p4, %p1199_p12  ;;  %p957_p3 = por %p956_p13, %p955_p10 }
  0x70   : > { %510 = vperm.xlu0 %872, %v498_v6   ;;  %502 = vperm.xlu1 %873, %v499_v7   ;;  %p951_p8 = pneg %p950_p6 }
  0x72   : > { %p958_p7 = pnand %p957_p3, %p951_p8 }
  0x74   : > { %874 = vset.pattern.permute.xlu1 %v1063_v8  ;;  %875 = vset.pattern.permute.xlu0 %v1064_v9 }
  0x75   : > { %532 = vperm.xlu1 %874, %v498_v6   ;;  %554 = vperm.xlu0 %875, %v498_v6  }
  0x79   : > { %876 = vset.pattern.permute.xlu1 %v1065_v10  ;;  %877 = vset.pattern.permute.xlu0 %v1065_v10 }
  0x7a   : > { %576 = vperm.xlu1 %876, %v498_v6  }
  0xca   : > { %v333_v13 = vpop.permute.xlu1 %332  ;;  %v324_v14 = vpop.permute.xlu0 %323 }
  0xce   : > { %v335_v19 = vpop.permute.xlu1 %334  ;;  %v326_v20 = vpop.permute.xlu0 %325 }
  0xcf   : > { %v337_v21 = vsel %vm336_vm0, %v333_v13, %v335_v19  ;;  %v338_v22 = vsel %vm336_vm0, %v335_v19, %v333_v13  ;;  %v330_v23 = vsel %vm329_vm1, %v324_v14, %v326_v20  ;;  %v331_v24 = vsel %vm329_vm1, %v326_v20, %v324_v14 }
  0xd0   : > { %v374_v25 = vmul.f32 %v362_v15, %v338_v22  ;;  %v375_v26 = vmul.f32 %v363_v16, %v337_v21  ;;  %v372_v27 = vmul.f32 %v360_v17, %v331_v24  ;;  %v373_v28 = vmul.f32 %v361_v18, %v330_v23 }
  0xd1   : > { %v514_v20 = vshrl.u32 %v327_v11, 7 }
  0xd2   : > { %v342_v29 = vpop.permute.xlu1 %341  ;;  %v340_v30 = vpop.permute.xlu0 %339  ;;  %v780_v31 = vpack.c.bf16 %v375_v26, %v373_v28  ;;  %v782_v32 = vpack.c.bf16 %v374_v25, %v372_v27 }
  0xd3   : > { %v344_v35 = vsel %vm343_vm2, %v340_v30, %v342_v29  ;;  %v345_v36 = vsel %vm343_vm2, %v342_v29, %v340_v30  ;;  %v515_v24 = vsub.s32 4, %v514_v20  ;;  %v537_v25 = vsub.s32 5, %v514_v20 }
  0xd4   : > { %781 = vmatprep.subr.bf16.mxu0 %v780_v31  ;;  %792 = vmatprep.subr.bf16.mxu1 %v780_v31  ;;  %v376_v45 = vmul.f32 %v364_v33, %v345_v36  ;;  %v377_v46 = vmul.f32 %v365_v34, %v344_v35  ;;  %v559_v26 = vsub.s32 6, %v514_v20 }
  0xd5   : > { %783 = vmatpush1.bf16.msra.mxu0 %v782_v32  ;;  %795 = vmatpush1.bf16.msra.mxu1 %v782_v32  ;;  %v581_v32 = vsub.s32 7, %v514_v20 }
  0xd6   : > { %v349_v39 = vpop.permute.xlu1 %348  ;;  %v347_v40 = vpop.permute.xlu0 %346 }
  0xd7   : > { %v351_v41 = vsel %vm350_vm3, %v347_v40, %v349_v39  ;;  %v352_v42 = vsel %vm350_vm3, %v349_v39, %v347_v40 }
  0xd8   : > { %v378_v47 = vmul.f32 %v366_v37, %v352_v42  ;;  %v379_v48 = vmul.f32 %v367_v38, %v351_v41 }
  0xda   : > { %v356_v51 = vpop.permute.xlu1 %355  ;;  %v354_v52 = vpop.permute.xlu0 %353  ;;  %v784_v53 = vpack.c.bf16 %v379_v48, %v377_v46  ;;  %v786_v54 = vpack.c.bf16 %v378_v47, %v376_v45 }
  0xdb   : > { %v358_v57 = vsel %vm357_vm4, %v354_v52, %v356_v51  ;;  %v359_v58 = vsel %vm357_vm4, %v356_v51, %v354_v52 }
  0xdc   : > { %v382_v59 = vmul.f32 %v370_v49, %v358_v57  ;;  %v383_v60 = vmul.f32 %v371_v50, %v359_v58  ;;  %785 = vmatprep.subr.bf16.mxu0 %v784_v53  ;;  %793 = vmatprep.subr.bf16.mxu1 %v784_v53 }
  0xdd   : > { %787 = vmatpush1.bf16.msra.mxu0 %v786_v54  ;;  %796 = vmatpush1.bf16.msra.mxu1 %v786_v54 }
  0xde   : > { %v788_v61 = vpack.c.bf16 %v383_v60, %v381_v55  ;;  %v790_v62 = vpack.c.bf16 %v382_v59, %v380_v56 }
  0xe0   : > { %789 = vmatprep.subr.bf16.mxu0 %v788_v61  ;;  %794 = vmatprep.subr.bf16.mxu1 %v788_v61 }
  0xe1   : > { %791 = vmatpush1.bf16.msra.mxu0 %v790_v62  ;;  %797 = vmatpush1.bf16.msra.mxu1 %v790_v62 }
  0xe4   : > { %766 = vmatmul.mubr.msk.f32.vlgmr.msra.gmra.mrb[0].mxu1 %vm398_vm5, %v385_v63  ;;  %765 = vmatmul.mubr.msk.f32.vlgmr.msra.gmra.mrb[0].mxu0 %vm398_vm5, %v384_v2 }
  0xeb   : > { %v396_v3 = vpop.permute.xlu0 %395  ;;  %v391_v13 = vpop.permute.xlu1 %390 }
  0xef   : > { %v503_v21 = vpop.permute.xlu1 %502  ;;  %v511_v28 = vpop.permute.xlu0 %510 }
  0xf0   : > { %v504_v34 = vrot.slane %v503_v21, 4 }
  0xf2   : > { %v506_v48 = vadd.f32 %v504_v34, %v1256_v0  ;;  %v507_v51 = vadd.f32 %v504_v34, %v1260_v1 }
  0xf4   : > { %v533_v29 = vpop.permute.xlu1 %532  ;;  %v555_v39 = vpop.permute.xlu0 %554 }
  0xf9   : > { %v577_v46 = vpop.permute.xlu1 %576 }
 0x1b7   : > { %v477_v4 = vpop.f32.mrb[0].mxu1  ;;  %v471_v5 = vpop.f32.mrb[0].mxu0 }
 0x1b8   : > { %v478_v6 = vadd.f32 %v477_v4, %v396_v3  ;;  %v479_v7 = vpop.f32.mrb[1].mxu1  ;;  %v473_v8 = vpop.f32.mrb[1].mxu0  ;;  %v472_v14 = vadd.f32 %v471_v5, %v391_v13 }
 0x1b9   : > { %v480_v9 = vadd.f32 %v479_v7, %v396_v3  ;;  %v474_v15 = vadd.f32 %v473_v8, %v391_v13 }
 0x1ba   : > { %v767_v10 = vmul.f32 -1.442695, %v478_v6 }
 0x1bb   : > { %v768_v12 = vmul.f32 -1.442695, %v480_v9 }
 0x1bc   : > { %878 = vpow2.f32 %v767_v10 }
 0x1bd   : > { %880 = vpow2.f32 %v768_v12 }
 0x1be   : > { %882 = vtanh.f32 %v472_v14 }
 0x1bf   : > { %884 = vtanh.f32 %v474_v15 }
 0x1c6   : > { %v879_v16 = vpop.eup %878 }
 0x1c7   : > { %v881_v17 = vpop.eup %880  ;;  %v490_v18 = vadd.f32 1.0, %v879_v16 }
 0x1c8   : > { %v491_v19 = vadd.f32 1.0, %v881_v17  ;;  %v883_v22 = vpop.eup %882 }
 0x1c9   : > { %886 = vrcp.f32 %v490_v18  ;;  %v885_v23 = vpop.eup %884 }
 0x1ca   : > { %888 = vrcp.f32 %v491_v19 }
 0x1d3   : > { %v887_v27 = vpop.eup %886 }
 0x1d4   : > { %v889_v30 = vpop.eup %888  ;;  %v496_v31 = vmul.f32 %v887_v27, %v883_v22 }
 0x1d5   : > { %v497_v33 = vmul.f32 %v889_v30, %v885_v23 }
 0x1d6   : > { %v516_v35 = vrot.slane %v496_v31, %v515_v24  ;;  %v538_v36 = vrot.slane %v496_v31, %v537_v25  ;;  %v560_v11 = vrot.slane %v496_v31, %v559_v26  ;;  %v582_v43 = vrot.slane %v496_v31, %v581_v32 }
 0x1d7   : > { %v520_v37 = vrot.slane %v497_v33, %v515_v24  ;;  %v542_v38 = vrot.slane %v497_v33, %v537_v25  ;;  %v564_v40 = vrot.slane %v497_v33, %v559_v26  ;;  %v586_v47 = vrot.slane %v497_v33, %v581_v32 }
 0x1d8   : > { %v521_v41 = vmul.f32 %v516_v35, %v511_v28  ;;  %v543_v42 = vmul.f32 %v538_v36, %v533_v29  ;;  %v565_v50 = vmul.f32 %v560_v11, %v555_v39  ;;  %v587_v56 = vmul.f32 %v582_v43, %v577_v46 }
 0x1d9   : > { %v522_v44 = vmul.f32 %v520_v37, %v511_v28  ;;  %v544_v45 = vmul.f32 %v542_v38, %v533_v29  ;;  %v566_v53 = vmul.f32 %v564_v40, %v555_v39  ;;  %v599_v57 = vcombine.low %v496_v31, %v497_v33 }
 0x1da   : > { %v525_v49 = vrot.slane %v521_v41, 4  ;;  %v547_v55 = vrot.slane %v543_v42, 4  ;;  %v588_v58 = vmul.f32 %v586_v47, %v577_v46  ;;  %v569_v60 = vrot.slane %v565_v50, 4 }
 0x1db   : > { %v526_v52 = vrot.slane %v522_v44, 4  ;;  %v548_v1 = vrot.slane %v544_v45, 4  ;;  %601 = vst [vmem:[%s313_s20] sm:$0xff] %v599_v57  ;;  %v570_v62 = vrot.slane %v566_v53, 4 }
 0x1dc   : > { %v529_v54 = vadd.f32 %v525_v49, %v506_v48 }
 0x1dd   : > { %v530_v0 = vadd.f32 %v526_v52, %v507_v51 }
 0x1de   : > { %v551_v59 = vadd.f32 %v547_v55, %v529_v54 }
 0x1df   : > { %v552_v61 = vadd.f32 %v548_v1, %v530_v0 }
 0x1e0   : > { %961 = shalt.err (!%p958_p7)
}
 0x1e1   : > { %s962_s14 = scalar_lea.hbm %s1305_s22, 128  ;;  %s966_s21 = scalar_lea.hbm %s1388_s6, 256 }
 0x1e2   : > { %p963_p9 = scmp.ne.s32.totalorder %s1305_s22, %s962_s14  ;;  %p967_p0 = scmp.lt.u32.totalorder %s1305_s22, %s1388_s6 }
 0x1e3   : > { %p968_p1 = scmp.lt.u32.totalorder %s966_s21, %s962_s14  ;;  %p970_p4 = scmp.lt.u32.totalorder %s962_s14, %s1305_s22 }
 0x1e4   : > { %p964_p2 = pnand %p963_p9, %p1199_p12 }
 0x1e5   : > { %p969_p11 = por %p968_p1, %p967_p0 }
 0x1e6   : > { %p965_p5 = pneg %p964_p2 }
 0x1e7   : > { %p971_p6 = por %p970_p4, %p969_p11 }
 0x1e9   : > { %p972_p8 = pnand %p971_p6, %p965_p5 }
 0x1eb   : > { %975 = shalt.err (!%p972_p8)
}
 0x1ec   : > { %804 = dma.vmem_to_hbm [thread:$0]  (%p1199_p12), %s1307_s11, 128, %s1305_s22, %s608_s12   ;;  %v591_v63 = vrot.slane %v587_v56, 4  ;;  %v573_v2 = vadd.f32 %v569_v60, %v551_v59  ;;  %v592_v3 = vrot.slane %v588_v58, 4  ;;  %v574_v4 = vadd.f32 %v570_v62, %v552_v61 }
 0x1ed   : > { %s320_s23 = scalar_lea.vmem [#allocation8], %s763_s15  ;;  %s1338_s17 = scalar_lea.hbm %s1389_s7, %s778_s29 }
 0x1ee   : > { %v595_v5 = vadd.f32 %v591_v63, %v573_v2  ;;  %s641_s30 = sshll.u32 %s320_s23, 4  ;;  %v596_v6 = vadd.f32 %v592_v3, %v574_v4  ;;  %s613_s11 = scalar_lea.sflag [#allocation9], %s1244_s10  ;;  %s1340_s30 = int_to_ptr.vmem [resolvable:$true] %s641_s30 }
 0x1ef   : > { %s976_s22 = scalar_lea.vmem %s1340_s30, 128  ;;  %s1067_s15 = smov [#allocation8]  }
 0x1f0   : > { %v604_v7 = vcombine.high %v595_v5, %v596_v6  ;;  %p977_p10 = scmp.ne.s32.totalorder %s1340_s30, %s976_s22  ;;  %s980_s12 = sshll.u32 %s1067_s15, 4  ;;  %s981_s12 = int_to_ptr.vmem [resolvable:$false] %s980_s12 }
 0x1f1   : > { %s982_s28 = scalar_lea.vmem %s981_s12, 256  ;;  %p983_p7 = scmp.lt.s32.totalorder %s1340_s30, %s981_s12 }
 0x1f2   : > { %606 = vst [vmem:[%s320_s23] sm:$0xff] %v604_v7  ;;  %p978_p13 = pnand %p977_p10, %p1199_p12  ;;  %p984_p9 = scmp.lt.s32.totalorder %s982_s28, %s976_s22 }
 0x1f4   : > { %p979_p3 = pneg %p978_p13  ;;  %p985_p2 = por %p984_p9, %p983_p7 }
 0x1f6   : > { %p986_p5 = pnand %p985_p2, %p979_p3 }
 0x1f8   : > { %989 = shalt.err (!%p986_p5)
}
 0x1f9   : > { %s990_s10 = scalar_lea.hbm %s1338_s17, 128  ;;  %s994_s9 = scalar_lea.hbm %s1389_s7, 256 }
 0x1fa   : > { %p991_p0 = scmp.ne.s32.totalorder %s1338_s17, %s990_s10  ;;  %p995_p4 = scmp.lt.u32.totalorder %s1338_s17, %s1389_s7 }
 0x1fb   : > { %p996_p6 = scmp.lt.u32.totalorder %s994_s9, %s990_s10  ;;  %p998_p10 = scmp.lt.u32.totalorder %s990_s10, %s1338_s17 }
 0x1fc   : > { %p992_p1 = pnand %p991_p0, %p1199_p12 }
 0x1fd   : > { %p997_p8 = por %p996_p6, %p995_p4 }
 0x1fe   : > { %p993_p11 = pneg %p992_p1 }
 0x1ff   : > { %p999_p13 = por %p998_p10, %p997_p8 }
 0x201   : > { %p1000_p3 = pnand %p999_p13, %p993_p11 }
 0x203   : > { %1003 = shalt.err (!%p1000_p3)
}
 0x204   : > { %805 = dma.vmem_to_hbm [thread:$0]  (%p1199_p12), %s1340_s30, 128, %s1338_s17, %s613_s11  }
 0x205 PF: > { %s653_s14 = sand.u32 1, %s1038_s24   ;;  %p1404_p7 = scmp.ne.s32.totalorder %s1394_s8, 0 }
 0x206   : > { %p1405_p9 = scmp.ge.s32.totalorder %s1050_s27, 2  ;;  %s654_s20 = scalar_lea.sflag [#allocation4], %s653_s14 }
 0x208   : > { %p817_p2 = pnand %p1405_p9, %p1404_p7 }
 0x20a   : > { %1029 = dma.done.wait (!%p817_p2), %s654_s20, 128  }
 0x20b   : > { %1031 = vsyncadd (!%p817_p2), %s654_s20, 4294967168  ;;  %s663_s22 = scalar_lea.sflag [#allocation9], %s653_s14 }
 0x20c   : > { %1033 = dma.done.wait (!%p817_p2), %s663_s22, 128  }
 0x20d   : > { %1035 = vsyncadd (!%p817_p2), %s663_s22, 4294967168  ;;  %p25_p12 = scmp.ge.s32.totalorder %s1164_s13, 4   ;;  %s1406_s24 = smov %s1042_s25 }
 0x20e   : > { %s1407_s25 = smov %s1046_s26  ;;  %s1408_s26 = smov %s1195_s18 }
 0x20f   : > { %s1409_s27 = smov %s1164_s13  ;;  %27 = sbr.rel (!%p25_p12) target bundleno = 8 (0x8), region = 110 }
 0x216   :  { %668 = vsyncpa [#allocation3], 1 }
 0x217   :  { %670 = vsyncpa [#allocation3 + $0x1], 1 }
 0x218   :  { %671 = vsyncpa [#allocation6], 1 }
 0x219   :  { %672 = vsyncpa [#allocation4], 1 }
 0x21a   :  { %674 = vsyncpa [#allocation4 + $0x1], 1 }
 0x21b   :  { %675 = vsyncpa [#allocation9], 1 }
 0x21c   :  { %677 = vsyncpa [#allocation9 + $0x1], 1 }

</bundles_post_ra>
